<compile_context>
chip_gen: v7x
topology: tpu7x:2x2x1
jax: 0.10.0
libtpu: 0.0.40
codegen_flags: <defaults>
</compile_context>

<pallas_src>
import functools

import jax
import jax.numpy as jnp
from jax.experimental import pallas as pl
from jax.experimental.pallas import tpu as pltpu

_TILE_BYTES = 4 * 1024 * 1024       # per-stream tile target (all generations)
_SMALL_BYTES = 256 * 1024           # below this (per state array) use plain jnp
_MIN_ROW_BLOCKS = 4                 # keep a few row blocks for v7x's 2 TCs


def _zz_kernel(c_ref, coef_ref, sre_ref, sim_ref, ore_ref, oim_ref):
    """out = (c + i*coef) * (sre + i*sim); coef broadcast over rows."""
    c = c_ref[0]                  # scalar cos(w/2) from SMEM
    coef = coef_ref[...]          # (1, TD)  == -sin(w/2) * sign pattern
    sre = sre_ref[...]            # (TM, TD)
    sim = sim_ref[...]            # (TM, TD)
    ore_ref[...] = c * sre - coef * sim
    oim_ref[...] = c * sim + coef * sre


def _zz_sign_pattern(n_qubits, idx):
    """±1 pattern z such that diag = cos(w/2) - 1j*sin(w/2)*z (mirrors torch kron)."""
    z4 = jnp.array([1.0, -1.0, -1.0, 1.0], jnp.float32)
    i1 = jnp.ones(2 ** idx, jnp.float32)
    i2 = jnp.ones(2 ** (n_qubits - 2 - idx), jnp.float32)
    return jnp.kron(i1, jnp.kron(z4, i2))          # length 2**n_qubits


def _vmem_limit_bytes():
    """Generation-aware VMEM limit: 64 MiB on 128 MiB parts, 44 MiB on v7x."""
    vmem = 64 * 1024 * 1024
    try:
        vmem = int(getattr(pltpu.get_tpu_info(), "vmem_capacity_bytes", vmem))
    except Exception:
        pass
    return 64 * 1024 * 1024 if vmem >= 128 * 1024 * 1024 else 44 * 1024 * 1024


@functools.partial(
    jax.jit, static_argnames=("n_blocks", "n_qubits", "idx", "use_pallas"))
def zz_layer_forward(state_re, state_im, weight, *, n_blocks, n_qubits, idx,
                     use_pallas=None):
    """state_{re,im}: (batch, n_blocks, 2, 2**n_qubits) float32. Returns same shapes."""
    if n_qubits < 2:
        raise ValueError("ZZ gate needs n_qubits >= 2")
    if idx == n_qubits - 1 or idx == -1:
        # TODO(synk): the original torch module builds a 2**(n_qubits+1)-long
        # diagonal in this branch, which cannot broadcast against the
        # 2**n_qubits state; that branch is shape-inconsistent, so reject it.
        raise ValueError("wrap-around idx (n_qubits-1 / -1) is unsupported: the "
                         "reference module is shape-inconsistent for this case")
    if not 0 <= idx <= n_qubits - 2:
        raise ValueError(f"idx={idx} out of range for n_qubits={n_qubits}")

    half = jnp.asarray(weight, jnp.float32) * 0.5
    c = jnp.cos(half)                               # real part of diag (constant)
    sign = _zz_sign_pattern(n_qubits, idx)          # (D,) in {+1,-1}
    coef = (-jnp.sin(half)) * sign                  # (D,) imag part of diag
    D = int(sign.shape[0])

    orig_shape = state_re.shape
    batch = orig_shape[0]
    M = batch * n_blocks * 2
    total = M * D

    if use_pallas is None:
        use_pallas = total * 4 >= _SMALL_BYTES

    if not use_pallas:
        # Tiny problem: a fused XLA elementwise expression beats the fixed
        # pallas_call + grid-step overhead.
        coef_b = coef.reshape((1,) * (state_re.ndim - 1) + (D,))
        ore = c * state_re - coef_b * state_im
        oim = c * state_im + coef_b * state_re
        return ore, oim

    # ---- Pallas path -------------------------------------------------------
    # Lane folding: pack rows into lanes until the last dim is >= 128.
    fold = max(1, 128 // D)                         # D is a power of 2
    Df = D * fold                                   # always a multiple of 128
    Mf_raw = -(-M // fold)                          # ceil; pad rows, never shrink fold

    # Lane tile: prefer the full (contiguous) row when an 8-row slab fits the
    # per-stream tile budget; only split lanes for very large Df.
    if 8 * Df * 4 <= _TILE_BYTES:
        TD = Df
    else:
        TD = max(128, _TILE_BYTES // (8 * 4))       # power of 2, divides Df

    # Row tile: ~4 MiB per stream, multiple of 8, but keep a few row blocks so
    # v7x's two TensorCores both get work.
    if Mf_raw <= 8:
        TM = Mf_raw                                 # block == full dim (allowed)
    else:
        rows_budget = max(8, (_TILE_BYTES // (4 * TD)) // 8 * 8)
        rows_split = max(8, ((-(-Mf_raw // _MIN_ROW_BLOCKS)) + 7) // 8 * 8)
        TM = min(rows_budget, rows_split)

    n_row_blocks = pl.cdiv(Mf_raw, TM)
    Mf = n_row_blocks * TM                          # pad rows to a multiple of TM
    grid = (n_row_blocks, Df // TD)

    # Flatten, zero-pad to (Mf, Df), and build the folded coefficient row.
    pad = Mf * Df - total
    sre = state_re.reshape(-1)
    sim = state_im.reshape(-1)
    if pad:
        sre = jnp.pad(sre, (0, pad))
        sim = jnp.pad(sim, (0, pad))
    sre = sre.reshape(Mf, Df)
    sim = sim.reshape(Mf, Df)
    coef_f = jnp.tile(coef, fold).reshape(1, Df)
    c_arr = c.reshape(1)

    state_spec = pl.BlockSpec((TM, TD), lambda i, j: (i, j))
    coef_spec = pl.BlockSpec((1, TD), lambda i, j: (0, j))
    smem_spec = pl.BlockSpec(memory_space=pltpu.MemorySpace.SMEM)

    ore, oim = pl.pallas_call(
        _zz_kernel,
        grid=grid,
        in_specs=[smem_spec, coef_spec, state_spec, state_spec],
        out_specs=[state_spec, state_spec],
        out_shape=(
            jax.ShapeDtypeStruct((Mf, Df), jnp.float32),
            jax.ShapeDtypeStruct((Mf, Df), jnp.float32),
        ),
        input_output_aliases={2: 0, 3: 1},          # sre -> ore, sim -> oim
        compiler_params=pltpu.CompilerParams(
            dimension_semantics=("parallel", "parallel"),
            vmem_limit_bytes=_vmem_limit_bytes(),
        ),
    )(c_arr, coef_f, sre, sim)

    out_re = ore.reshape(-1)[:total].reshape(orig_shape)
    out_im = oim.reshape(-1)[:total].reshape(orig_shape)
    return out_re, out_im


def _reference(state_re, state_im, weight, n_qubits, idx):
    """Pure-JAX complex reference mirroring the torch module math exactly."""
    half = jnp.float32(weight) / 2.0
    z4 = jnp.array([1.0, -1.0, -1.0, 1.0], jnp.float32)
    rz = (jnp.cos(half * z4) - 1j * jnp.sin(half * z4)).astype(jnp.complex64)
    i1 = jnp.ones(2 ** idx, jnp.complex64)
    i2 = jnp.ones(2 ** (n_qubits - 2 - idx), jnp.complex64)
    diag = jnp.kron(i1, jnp.kron(rz, i2))
    state = state_re.astype(jnp.complex64) + 1j * state_im.astype(jnp.complex64)
    out = diag * state
    return out.real, out.imag


if __name__ == "__main__":
    key = jax.random.PRNGKey(0)
    weight = jnp.float32(0.7)       # deterministic rotation angle (ZZ_layer.weights)

    # Case A: small demo shape (D=32 -> lane folding), forced through Pallas.
    batch, n_blocks, n_qubits, idx = 2, 2, 5, 1
    D = 2 ** n_qubits
    key, k1, k2 = jax.random.split(key, 3)
    sre_a = jax.random.normal(k1, (batch, n_blocks, 2, D), jnp.float32)
    sim_a = jax.random.normal(k2, (batch, n_blocks, 2, D), jnp.float32)
    out_re_a, out_im_a = zz_layer_forward(
        sre_a, sim_a, weight, n_blocks=n_blocks, n_qubits=n_qubits, idx=idx,
        use_pallas=True)
    jax.block_until_ready((out_re_a, out_im_a))
    ref_re_a, ref_im_a = _reference(sre_a, sim_a, weight, n_qubits, idx)
    assert jnp.allclose(out_re_a, ref_re_a, atol=1e-5)
    assert jnp.allclose(out_im_a, ref_im_a, atol=1e-5)

    # Same tiny shape through the auto-dispatched jnp fast path.
    out_re_f, out_im_f = zz_layer_forward(
        sre_a, sim_a, weight, n_blocks=n_blocks, n_qubits=n_qubits, idx=idx)
    jax.block_until_ready((out_re_f, out_im_f))
    assert jnp.allclose(out_re_f, ref_re_a, atol=1e-5)
    assert jnp.allclose(out_im_f, ref_im_a, atol=1e-5)

    # Case B: D=1024 (no folding), multi-block row grid, forced through Pallas.
    batch_b, n_blocks_b, n_qubits_b, idx_b = 4, 4, 10, 3
    D_b = 2 ** n_qubits_b
    key, k3, k4 = jax.random.split(key, 3)
    sre_b = jax.random.normal(k3, (batch_b, n_blocks_b, 2, D_b), jnp.float32)
    sim_b = jax.random.normal(k4, (batch_b, n_blocks_b, 2, D_b), jnp.float32)
    out_re_b, out_im_b = zz_layer_forward(
        sre_b, sim_b, weight, n_blocks=n_blocks_b, n_qubits=n_qubits_b, idx=idx_b,
        use_pallas=True)
    jax.block_until_ready((out_re_b, out_im_b))
    ref_re_b, ref_im_b = _reference(sre_b, sim_b, weight, n_qubits_b, idx_b)
    assert jnp.allclose(out_re_b, ref_re_b, atol=1e-5)
    assert jnp.allclose(out_im_b, ref_im_b, atol=1e-5)

    print("KERNEL_OK")
</pallas_src>

<mosaic_0001>
module attributes {stable_mosaic.version = 11 : i64} {
  func.func @_zz_kernel(%arg0: i32, %arg1: i32, %arg2: memref<1xf32, #tpu.memory_space<smem>>, %arg3: memref<1x128xf32, #tpu.memory_space<vmem>>, %arg4: memref<2x128xf32, #tpu.memory_space<vmem>>, %arg5: memref<2x128xf32, #tpu.memory_space<vmem>>, %arg6: memref<2x128xf32, #tpu.memory_space<vmem>>, %arg7: memref<2x128xf32, #tpu.memory_space<vmem>>) attributes {dimension_semantics = [#tpu.dimension_semantics<parallel>, #tpu.dimension_semantics<parallel>], iteration_bounds = array<i64: 1, 1>, scalar_prefetch = 0 : i64, scratch_operands = 0 : i64, tpu.core_type = #tpu.core_type<tc>, window_params = [{transform_indices = @transform_0, window_bounds = array<i64: 1>}, {transform_indices = @transform_1, window_bounds = array<i64: 1, 128>}, {transform_indices = @transform_2, window_bounds = array<i64: 2, 128>}, {transform_indices = @transform_3, window_bounds = array<i64: 2, 128>}, {transform_indices = @transform_4, window_bounds = array<i64: 2, 128>}, {transform_indices = @transform_5, window_bounds = array<i64: 2, 128>}]} {
    %c0 = arith.constant 0 : index
    %0 = memref.load %arg2[%c0] : memref<1xf32, #tpu.memory_space<smem>>
    %c0_0 = arith.constant 0 : index
    %c0_1 = arith.constant 0 : index
    %1 = vector.load %arg3[%c0_0, %c0_1] : memref<1x128xf32, #tpu.memory_space<vmem>>, vector<1x128xf32>
    %c0_2 = arith.constant 0 : index
    %c0_3 = arith.constant 0 : index
    %2 = vector.load %arg4[%c0_2, %c0_3] : memref<2x128xf32, #tpu.memory_space<vmem>>, vector<2x128xf32>
    %c0_4 = arith.constant 0 : index
    %c0_5 = arith.constant 0 : index
    %3 = vector.load %arg5[%c0_4, %c0_5] : memref<2x128xf32, #tpu.memory_space<vmem>>, vector<2x128xf32>
    %4 = vector.broadcast %0 : f32 to vector<2x128xf32>
    %5 = arith.mulf %4, %2 : vector<2x128xf32>
    %6 = vector.broadcast %1 : vector<1x128xf32> to vector<2x128xf32>
    %7 = arith.mulf %6, %3 : vector<2x128xf32>
    %8 = arith.subf %5, %7 : vector<2x128xf32>
    %c0_6 = arith.constant 0 : index
    %c0_7 = arith.constant 0 : index
    %9 = vector.load %arg6[%c0_6, %c0_7] : memref<2x128xf32, #tpu.memory_space<vmem>>, vector<2x128xf32>
    tpu.vector_store %arg6[%c0_6, %c0_7], %8 {strides = array<i32>} : memref<2x128xf32, #tpu.memory_space<vmem>>, vector<2x128xf32>,
    %10 = vector.broadcast %0 : f32 to vector<2x128xf32>
    %11 = arith.mulf %10, %3 : vector<2x128xf32>
    %12 = vector.broadcast %1 : vector<1x128xf32> to vector<2x128xf32>
    %13 = arith.mulf %12, %2 : vector<2x128xf32>
    %14 = arith.addf %11, %13 : vector<2x128xf32>
    %c0_8 = arith.constant 0 : index
    %c0_9 = arith.constant 0 : index
    %15 = vector.load %arg7[%c0_8, %c0_9] : memref<2x128xf32, #tpu.memory_space<vmem>>, vector<2x128xf32>
    tpu.vector_store %arg7[%c0_8, %c0_9], %14 {strides = array<i32>} : memref<2x128xf32, #tpu.memory_space<vmem>>, vector<2x128xf32>,
    return
  }
  func.func @transform_0(%arg0: i32, %arg1: i32) -> i32 {
    %c0_i32 = arith.constant 0 : i32
    %c0_i32_0 = arith.constant 0 : i32
    return %c0_i32 : i32
  }
  func.func @transform_1(%arg0: i32, %arg1: i32) -> (i32, i32) {
    %c0_i32 = arith.constant 0 : i32
    %c0_i32_0 = arith.constant 0 : i32
    return %c0_i32, %arg1 : i32, i32
  }
  func.func @transform_2(%arg0: i32, %arg1: i32) -> (i32, i32) {
    %c0_i32 = arith.constant 0 : i32
    return %arg0, %arg1 : i32, i32
  }
  func.func @transform_3(%arg0: i32, %arg1: i32) -> (i32, i32) {
    %c0_i32 = arith.constant 0 : i32
    return %arg0, %arg1 : i32, i32
  }
  func.func @transform_4(%arg0: i32, %arg1: i32) -> (i32, i32) {
    %c0_i32 = arith.constant 0 : i32
    return %arg0, %arg1 : i32, i32
  }
  func.func @transform_5(%arg0: i32, %arg1: i32) -> (i32, i32) {
    %c0_i32 = arith.constant 0 : i32
    return %arg0, %arg1 : i32, i32
  }
}

</mosaic_0001>

<bundles_post_ra>
// kernel: tile.8
= control target key start
LH: loop header
LB: loop body
LE: loop exit
PB: predicated region body
PF: predicated region fallthrough
CT: control target
= control target key end

     0   :  { %s22_s0 = inlined_call_operand.vmem [shape: f32[32], index: 0, kind: input, shape index: {}]   ;;  %s23_s1 = inlined_call_operand.vmem [shape: f32[4,32], index: 1, kind: output, shape index: {}]  }
   0x1   :  { %v4_v0 = vld [vmem:[%s22_s0] ss:$0 sm:$0xff] }
   0x2   :  { %5 = vst [vmem:[%s23_s1] sm:$0xf] %v4_v0 }

// kernel: tile.9
= control target key start
LH: loop header
LB: loop body
LE: loop exit
PB: predicated region body
PF: predicated region fallthrough
CT: control target
= control target key end

     0   :  { %vm7_vm0 = vcmask 261120   ;;  %s37_s8 = smov 32   ;;  %s38_s9 = smov 64   ;;  %vm13_vm1 = vcmask 1048320   ;;  %vm19_vm2 = vcmask 785920   ;;  %vm25_vm3 = vcmask 523520   ;;  %s55_s0 = inlined_call_operand.vmem [shape: f32[4,32], index: 0, kind: input, shape index: {}]   ;;  %s56_s1 = inlined_call_operand.vmem [shape: f32[1,128], index: 1, kind: output, shape index: {}]  }
   0x1   :  { %v4_v0 = vld [vmem:[%s55_s0] sm:$0xf]  ;;  %s36_s0 = smov 96  }
   0x2   :  { %5 = vst [vmem:[#allocation1] sm:$0xf] %v4_v0 }
   0x9   :  { %v10_v1 = vld [vmem:[#allocation1 + $0x3] sm:$0x1]   ;;  %v22_v2 = vld [vmem:[#allocation1 + $0x1] sm:$0x1]   ;;  %v6_v3 = vld [vmem:[#allocation1] sm:$0x1]  }
   0xa   :  { %11 = vrot.lane.b32.xlu0 %v10_v1, %s36_s0  ;;  %23 = vrot.lane.b32.xlu1 %v22_v2, %s37_s8  ;;  %v16_v4 = vld [vmem:[#allocation1 + $0x2] sm:$0x1]   ;;  %8 = vst.msk [vmem:[#allocation0] sm:$0x1] %vm7_vm0, %v6_v3  }
   0xe   :  { %17 = vrot.lane.b32.xlu0 %v16_v4, %s38_s9 }
  0x7c   :  { %v12_v5 = vpop.permute.xlu0 %11   ;;  %v24_v6 = vpop.permute.xlu1 %23  }
  0x7d   :  { %14 = vst.msk [vmem:[#allocation0] sm:$0x1] %vm13_vm1, %v12_v5  }
  0x80   :  { %v18_v7 = vpop.permute.xlu0 %17  }
  0x81   :  { %20 = vst.msk [vmem:[#allocation0] sm:$0x1] %vm19_vm2, %v18_v7  }
  0x82   :  { %26 = vst.msk [vmem:[#allocation0] sm:$0x1] %vm25_vm3, %v24_v6  }
  0x89   :  { %v30_v8 = vld [vmem:[#allocation0] sm:$0x1] }
  0x8a   :  { %32 = vst [vmem:[%s56_s1] sm:$0x1] %v30_v8 }

// kernel: zz_layer_forward.1
= control target key start
LH: loop header
LB: loop body
LE: loop exit
PB: predicated region body
PF: predicated region fallthrough
CT: control target
= control target key end

     0   :  { %s96_s0 = inlined_call_operand.<no memory space> [shape: f32[1], index: 0, kind: input, shape index: {}]   ;;  %s97_s1 = inlined_call_operand.vmem [shape: f32[1,128], index: 1, kind: input, shape index: {}]   ;;  %s98_s2 = inlined_call_operand.vmem [shape: f32[2,128], index: 2, kind: input, shape index: {}, may-alias: {2,4}]   ;;  %s99_s3 = inlined_call_operand.vmem [shape: f32[2,128], index: 3, kind: input, shape index: {}, may-alias: {3,5}]   ;;  %s100_s4 = inlined_call_operand.vmem [shape: f32[2,128], index: 4, kind: output, shape index: {0}, may-alias: {2,4}]   ;;  %s101_s5 = inlined_call_operand.vmem [shape: f32[2,128], index: 5, kind: output, shape index: {1}, may-alias: {3,5}]  }
   0x1   :  { %v47_v0 = vld [vmem:[%s97_s1] ss:$0 sm:$0xff]  ;;  %v24_v3 = vstv %s96_s0 }
   0x2   :  { %v22_v1 = vld [vmem:[%s98_s2] sm:$0x3] }
   0x3   :  { %v23_v2 = vld [vmem:[%s99_s3] sm:$0x3]  ;;  %v25_v4 = vmul.f32 %v24_v3, %v22_v1  ;;  %v36_v6 = vmul.f32 %v47_v0, %v22_v1 }
   0x4   :  { %v32_v5 = vmul.f32 %v47_v0, %v23_v2  ;;  %v35_v7 = vmul.f32 %v24_v3, %v23_v2 }
   0x6   :  { %v33_v8 = vsub.f32 %v25_v4, %v32_v5  ;;  %v37_v9 = vadd.f32 %v36_v6, %v35_v7 }
   0x8   :  { %34 = vst [vmem:[%s100_s4] sm:$0x3] %v33_v8  ;;  %38 = vst [vmem:[%s101_s5] sm:$0x3] %v37_v9 }

</bundles_post_ra>
